<compile_context>
chip_gen: v7x
topology: tpu7x:2x2x1
jax: 0.10.0
libtpu: 0.0.40
codegen_flags: <defaults>
</compile_context>

<pallas_src>
import functools

import jax
import jax.numpy as jnp
from jax import lax
from jax.experimental import pallas as pl
from jax.experimental.pallas import tpu as pltpu


def _round_up(x, m):
    return ((x + m - 1) // m) * m


def _mean_encoder_kernel(x_ref, w1t_ref, w2_ref, b2_ref, o_ref, acc_ref, *,
                         inv_s, tsc):
    # x_ref  : (TB, C1P, TS)  channels-first, TS lane-dense (multiple of 128)
    # w1t_ref: (Dp, C1P)      first 1x1-conv weights, transposed, b1 folded in
    # w2_ref : (Dp, Dp)       second 1x1-conv weights
    # b2_ref : (1, Dp)
    # o_ref  : (1, TB, Dp)    output tile (written at the last S step)
    # acc_ref: (Dp, TB) f32   running sum over S of relu(w1t @ x_b)
    si = pl.program_id(1)

    @pl.when(si == 0)
    def _init():
        acc_ref[...] = jnp.zeros_like(acc_ref)

    tb, c1p, ts = x_ref.shape
    dp = w1t_ref.shape[0]
    n_sub = ts // tsc

    w1t = w1t_ref[...]                                # loaded once per grid step

    for b in range(tb):                               # static unroll over batch rows
        def body(c, hacc):
            start = pl.multiple_of(c * tsc, tsc)
            xc = x_ref[b, :, pl.ds(start, tsc)]                        # (C1P, TSC)
            h = jnp.dot(w1t, xc, preferred_element_type=jnp.float32)   # (Dp, TSC) MXU
            return hacc + jnp.maximum(h, 0.0)                          # ReLU+acc (VPU)

        hacc = lax.fori_loop(0, n_sub, body,
                             jnp.zeros((dp, tsc), jnp.float32), unroll=True)
        # one cross-lane (XLU) reduction per batch row into the VMEM accumulator
        acc_ref[:, b:b + 1] += jnp.sum(hacc, axis=-1, keepdims=True)   # (Dp, 1)

    @pl.when(si == pl.num_programs(1) - 1)
    def _finalize():
        # sum_S(relu(h) @ w2 + b2) / S  ==  (acc^T @ w2) / S + b2
        out = lax.dot_general(acc_ref[...], w2_ref[...],
                              dimension_numbers=(((0,), (0,)), ((), ())),
                              preferred_element_type=jnp.float32)       # (TB, Dp)
        o_ref[0] = (out * jnp.float32(inv_s) + b2_ref[...]).astype(o_ref.dtype)


def mean_encoder_dspn(x_ncs, mask_bs, w1, b1, w2, b2, *, use_bf16=True):
    """x_ncs: (B, C, S) f32; mask_bs: (B, S) f32.
    w1: (C+1, D), b1: (D,), w2: (D, D), b2: (D,). Returns (B, D) f32."""
    B, C, S = x_ncs.shape
    C1 = C + 1
    D = w1.shape[1]
    assert w1.shape == (C1, D) and b1.shape == (D,)
    assert w2.shape == (D, D) and b2.shape == (D,)

    # --- tile sizing -------------------------------------------------------
    Dp = _round_up(D, 128)                  # lane-dense hidden/output dim
    C1P = _round_up(C1 + 1, 8)              # +1 ones channel (folded b1), sublane mult
    if B >= 32:                             # batch rows per grid step; keep >=2 batch
        TB = 16                             # programs so v7x megacore gets work
    elif B >= 2:
        TB = max(1, min(8, _round_up(B, 2) // 2))
    else:
        TB = 1
    B_pad = _round_up(B, TB)
    n_bt = B_pad // TB

    S128 = _round_up(S, 128)                # lane-dense set-dim tiles
    n_s = pl.cdiv(S128, 1024)               # <= 1024 set points per grid step
    TS = _round_up(pl.cdiv(S128, n_s), 128)
    S_pad = TS * n_s
    TSC = 128                               # in-register sub-chunk of the S tile

    in_dtype = jnp.bfloat16 if use_bf16 else jnp.float32

    # --- padded channels-first input (no transpose of x) --------------------
    # channels: [x (C) | mask (1) | ones-for-bias (1) | zero pad]; the ones channel
    # is 0 on padded S positions so padding contributes exactly relu(0) == 0.
    valid_s = (jnp.arange(S_pad) < S).astype(in_dtype)                       # (S_pad,)
    x_pad = jnp.pad(x_ncs.astype(in_dtype),
                    ((0, B_pad - B), (0, 0), (0, S_pad - S)))
    m_pad = jnp.pad(mask_bs.astype(in_dtype),
                    ((0, B_pad - B), (0, S_pad - S)))[:, None, :]
    chans = [x_pad, m_pad, jnp.broadcast_to(valid_s, (B_pad, 1, S_pad))]
    if C1P - C1 - 1 > 0:
        chans.append(jnp.zeros((B_pad, C1P - C1 - 1, S_pad), in_dtype))
    x_p = jnp.concatenate(chans, axis=1)                                     # (B_pad,C1P,S_pad)

    # --- weights: fold b1 into the ones-channel row; pad; transpose ---------
    w1_aug = jnp.concatenate([w1, b1[None, :]], axis=0)                      # (C1+1, D)
    w1t_p = (jnp.zeros((Dp, C1P), jnp.float32)
             .at[:D, :C1 + 1].set(w1_aug.T).astype(in_dtype))                # (Dp, C1P)
    w2_p = jnp.zeros((Dp, Dp), jnp.float32).at[:D, :D].set(w2)
    b2_p = jnp.zeros((1, Dp), jnp.float32).at[0, :D].set(b2)

    grid = (n_bt, S_pad // TS)              # batch tiles (parallel), S chunks (reduction)
    kernel = functools.partial(_mean_encoder_kernel, inv_s=1.0 / S, tsc=TSC)

    itemsize = jnp.dtype(in_dtype).itemsize
    cost = pl.CostEstimate(
        flops=int(2 * B_pad * S_pad * C1P * Dp + 2 * B_pad * Dp * Dp),
        transcendentals=0,
        bytes_accessed=int(x_p.size * itemsize + w1t_p.size * itemsize
                           + w2_p.size * 4 + b2_p.size * 4 + B_pad * Dp * 4))

    out = pl.pallas_call(
        kernel,
        out_shape=jax.ShapeDtypeStruct((n_bt, TB, Dp), jnp.float32),
        grid_spec=pltpu.PrefetchScalarGridSpec(
            num_scalar_prefetch=0,
            grid=grid,
            in_specs=[
                pl.BlockSpec((TB, C1P, TS), lambda bi, si: (bi, 0, si)),
                pl.BlockSpec((Dp, C1P), lambda bi, si: (0, 0)),
                pl.BlockSpec((Dp, Dp), lambda bi, si: (0, 0)),
                pl.BlockSpec((1, Dp), lambda bi, si: (0, 0)),
            ],
            out_specs=pl.BlockSpec((1, TB, Dp), lambda bi, si: (bi, 0, 0)),
            scratch_shapes=[pltpu.VMEM((Dp, TB), jnp.float32)],
        ),
        compiler_params=pltpu.CompilerParams(
            dimension_semantics=("parallel", "arbitrary")),
        cost_estimate=cost,
    )(x_p, w1t_p, w2_p, b2_p)

    return out.reshape(B_pad, Dp)[:B, :D]


def _reference(x_ncs, mask_bs, w1, b1, w2, b2):
    # Pure-JAX reference mirroring the PyTorch forward (f32 throughout).
    B, C, S = x_ncs.shape
    x = jnp.concatenate([x_ncs, mask_bs[:, None, :]], axis=1)                # (B, C+1, S)
    h = jnp.maximum(jnp.einsum('bcs,cd->bsd', x, w1) + b1, 0.0)              # (B, S, D)
    y = h @ w2 + b2                                                          # (B, S, D)
    return jnp.sum(y, axis=1) / S                                            # (B, D)


if __name__ == "__main__":
    key = jax.random.PRNGKey(0)

    def run_case(B, C, S, D, subkey, use_bf16, atol, rtol):
        kx, km, k1, k2, k3, k4 = jax.random.split(subkey, 6)
        x = jax.random.normal(kx, (B, C, S), dtype=jnp.float32)              # NCS layout
        mask = (jax.random.uniform(km, (B, S)) > 0.3).astype(jnp.float32)
        # PyTorch Conv1d weights (D, C_in, 1) stored as (C_in, D) for the matmul form.
        w1 = jax.random.normal(k1, (C + 1, D), dtype=jnp.float32) * 0.1
        b1 = jax.random.normal(k2, (D,), dtype=jnp.float32) * 0.1
        w2 = jax.random.normal(k3, (D, D), dtype=jnp.float32) * 0.1
        b2 = jax.random.normal(k4, (D,), dtype=jnp.float32) * 0.1

        out = jax.block_until_ready(
            mean_encoder_dspn(x, mask, w1, b1, w2, b2, use_bf16=use_bf16))
        ref = _reference(x, mask, w1, b1, w2, b2)
        assert out.shape == (B, D)
        err = float(jnp.max(jnp.abs(out - ref)))
        assert jnp.allclose(out, ref, atol=atol, rtol=rtol), \
            f"mismatch (B={B}, C={C}, S={S}, D={D}, bf16={use_bf16}): max_err={err}"

    k1, k2, k3 = jax.random.split(key, 3)
    # base shapes; f32 path, tight tolerance (validates exact bias-fold/padding logic)
    run_case(B=2, C=4, S=16, D=32, subkey=k1, use_bf16=False, atol=1e-4, rtol=1e-5)
    # exercises batch/S/channel padding + ones-channel gating of padded points
    run_case(B=3, C=4, S=21, D=32, subkey=k2, use_bf16=False, atol=1e-4, rtol=1e-5)
    # exercises multi-chunk S reduction + inner sub-chunk loop + default bf16 inputs
    run_case(B=2, C=4, S=1100, D=32, subkey=k3, use_bf16=True, atol=1e-2, rtol=1e-2)

    print("KERNEL_OK")
</pallas_src>

<mosaic_0001>
module attributes {stable_mosaic.version = 11 : i64} {
  func.func @_mean_encoder_kernel(%arg0: i32, %arg1: i32, %arg2: memref<1x8x128xf32, #tpu.memory_space<vmem>>, %arg3: memref<128x8xf32, #tpu.memory_space<vmem>>, %arg4: memref<128x128xf32, #tpu.memory_space<vmem>>, %arg5: memref<1x128xf32, #tpu.memory_space<vmem>>, %arg6: memref<1x1x128xf32, #tpu.memory_space<vmem>>, %arg7: memref<128x1xf32, #tpu.memory_space<vmem>>) attributes {dimension_semantics = [#tpu.dimension_semantics<parallel>, #tpu.dimension_semantics<arbitrary>], iteration_bounds = array<i64: 2, 1>, scalar_prefetch = 0 : i64, scratch_operands = 1 : i64, tpu.core_type = #tpu.core_type<tc>, window_params = [{transform_indices = @transform_0, window_bounds = array<i64: 1, 8, 128>}, {pipeline_mode = #tpu.pipeline_mode<synchronous>, transform_indices = @transform_1, window_bounds = array<i64: 128, 8>}, {pipeline_mode = #tpu.pipeline_mode<synchronous>, transform_indices = @transform_2, window_bounds = array<i64: 128, 128>}, {pipeline_mode = #tpu.pipeline_mode<synchronous>, transform_indices = @transform_3, window_bounds = array<i64: 1, 128>}, {transform_indices = @transform_4, window_bounds = array<i64: 1, 1, 128>}]} {
    %c0_i32 = arith.constant 0 : i32
    %0 = arith.cmpi eq, %arg1, %c0_i32 : i32
    %1 = arith.extui %0 : i1 to i32
    %c0_i32_0 = arith.constant 0 : i32
    %2 = arith.cmpi ne, %1, %c0_i32_0 : i32
    scf.if %2 {
      %cst_14 = arith.constant 0.000000e+00 : f32
      %22 = vector.broadcast %cst_14 : f32 to vector<128x1xf32>
      %c0_15 = arith.constant 0 : index
      %c0_16 = arith.constant 0 : index
      %23 = vector.load %arg7[%c0_15, %c0_16] : memref<128x1xf32, #tpu.memory_space<vmem>>, vector<128x1xf32>
      tpu.vector_store %arg7[%c0_15, %c0_16], %22 {strides = array<i32>} : memref<128x1xf32, #tpu.memory_space<vmem>>, vector<128x1xf32>,
    } else {
    }
    %c0 = arith.constant 0 : index
    %c0_1 = arith.constant 0 : index
    %3 = vector.load %arg3[%c0, %c0_1] : memref<128x8xf32, #tpu.memory_space<vmem>>, vector<128x8xf32>
    %cst = arith.constant 0.000000e+00 : f32
    %4 = vector.broadcast %cst : f32 to vector<128x128xf32>
    %c0_i32_2 = arith.constant 0 : i32
    %c128_i32 = arith.constant 128 : i32
    %5 = arith.muli %c0_i32_2, %c128_i32 : i32
    %6 = tpu.assume_multiple %5, 128 : i32
    %c0_3 = arith.constant 0 : index
    %c0_4 = arith.constant 0 : index
    %7 = arith.index_cast %6 : i32 to index
    %8 = vector.load %arg2[%c0_3, %c0_4, %7] : memref<1x8x128xf32, #tpu.memory_space<vmem>>, vector<1x8x128xf32>
    %9 = vector.shape_cast %8 : vector<1x8x128xf32> to vector<8x128xf32>
    %cst_5 = arith.constant dense<0.000000e+00> : vector<128x128xf32>
    %10 = tpu.matmul %3, %9, %cst_5 {dimension_numbers = #tpu.dot_dimension_numbers<[1], [0], [0], [1], [0, 0, 1, 1], [], []>} : vector<128x8xf32>, vector<8x128xf32>, vector<128x128xf32> -> vector<128x128xf32>
    %cst_6 = arith.constant 0.000000e+00 : f32
    %11 = vector.broadcast %cst_6 : f32 to vector<128x128xf32>
    %12 = arith.maximumf %10, %11 : vector<128x128xf32>
    %13 = arith.addf %4, %12 : vector<128x128xf32>
    %c1_i32 = arith.constant 1 : i32
    %c0_7 = arith.constant 0 : index
    %c0_8 = arith.constant 0 : index
    %14 = vector.load %arg7[%c0_7, %c0_8] : memref<128x1xf32, #tpu.memory_space<vmem>>, vector<128x1xf32>
    %cst_9 = arith.constant dense<0.000000e+00> : vector<128xf32>
    %15 = vector.multi_reduction <add>, %13, %cst_9 [1] : vector<128x128xf32> to vector<128xf32>
    %16 = vector.shape_cast %15 : vector<128xf32> to vector<128x1xf32>
    %17 = arith.addf %14, %16 : vector<128x1xf32>
    %c0_10 = arith.constant 0 : index
    %c0_11 = arith.constant 0 : index
    %18 = vector.load %arg7[%c0_10, %c0_11] : memref<128x1xf32, #tpu.memory_space<vmem>>, vector<128x1xf32>
    tpu.vector_store %arg7[%c0_10, %c0_11], %17 {strides = array<i32>} : memref<128x1xf32, #tpu.memory_space<vmem>>, vector<128x1xf32>,
    %c0_i32_12 = arith.constant 0 : i32
    %19 = arith.cmpi eq, %arg1, %c0_i32_12 : i32
    %20 = arith.extui %19 : i1 to i32
    %c0_i32_13 = arith.constant 0 : i32
    %21 = arith.cmpi ne, %20, %c0_i32_13 : i32
    scf.if %21 {
      %c0_14 = arith.constant 0 : index
      %c0_15 = arith.constant 0 : index
      %22 = vector.load %arg7[%c0_14, %c0_15] : memref<128x1xf32, #tpu.memory_space<vmem>>, vector<128x1xf32>
      %c0_16 = arith.constant 0 : index
      %c0_17 = arith.constant 0 : index
      %23 = vector.load %arg4[%c0_16, %c0_17] : memref<128x128xf32, #tpu.memory_space<vmem>>, vector<128x128xf32>
      %cst_18 = arith.constant dense<0.000000e+00> : vector<1x128xf32>
      %24 = tpu.matmul %22, %23, %cst_18 {dimension_numbers = #tpu.dot_dimension_numbers<[0], [0], [1], [1], [0, 1, 1, 1], [], []>} : vector<128x1xf32>, vector<128x128xf32>, vector<1x128xf32> -> vector<1x128xf32>
      %cst_19 = arith.constant 6.250000e-02 : f32
      %25 = vector.broadcast %cst_19 : f32 to vector<1x128xf32>
      %26 = arith.mulf %24, %25 : vector<1x128xf32>
      %c0_20 = arith.constant 0 : index
      %c0_21 = arith.constant 0 : index
      %27 = vector.load %arg5[%c0_20, %c0_21] : memref<1x128xf32, #tpu.memory_space<vmem>>, vector<1x128xf32>
      %28 = arith.addf %26, %27 : vector<1x128xf32>
      %c0_22 = arith.constant 0 : index
      %c0_23 = arith.constant 0 : index
      %c0_24 = arith.constant 0 : index
      %29 = vector.load %arg6[%c0_22, %c0_23, %c0_24] : memref<1x1x128xf32, #tpu.memory_space<vmem>>, vector<1x1x128xf32>
      %30 = vector.shape_cast %29 : vector<1x1x128xf32> to vector<1x128xf32>
      %31 = vector.shape_cast %28 : vector<1x128xf32> to vector<1x1x128xf32>
      tpu.vector_store %arg6[%c0_22, %c0_23, %c0_24], %31 {strides = array<i32>} : memref<1x1x128xf32, #tpu.memory_space<vmem>>, vector<1x1x128xf32>,
    } else {
    }
    return
  }
  func.func @transform_0(%arg0: i32, %arg1: i32) -> (i32, i32, i32) {
    %c0_i32 = arith.constant 0 : i32
    %c0_i32_0 = arith.constant 0 : i32
    return %arg0, %c0_i32, %arg1 : i32, i32, i32
  }
  func.func @transform_1(%arg0: i32, %arg1: i32) -> (i32, i32) {
    %c0_i32 = arith.constant 0 : i32
    %c0_i32_0 = arith.constant 0 : i32
    %c0_i32_1 = arith.constant 0 : i32
    return %c0_i32, %c0_i32_0 : i32, i32
  }
  func.func @transform_2(%arg0: i32, %arg1: i32) -> (i32, i32) {
    %c0_i32 = arith.constant 0 : i32
    %c0_i32_0 = arith.constant 0 : i32
    %c0_i32_1 = arith.constant 0 : i32
    return %c0_i32, %c0_i32_0 : i32, i32
  }
  func.func @transform_3(%arg0: i32, %arg1: i32) -> (i32, i32) {
    %c0_i32 = arith.constant 0 : i32
    %c0_i32_0 = arith.constant 0 : i32
    %c0_i32_1 = arith.constant 0 : i32
    return %c0_i32, %c0_i32_0 : i32, i32
  }
  func.func @transform_4(%arg0: i32, %arg1: i32) -> (i32, i32, i32) {
    %c0_i32 = arith.constant 0 : i32
    %c0_i32_0 = arith.constant 0 : i32
    %c0_i32_1 = arith.constant 0 : i32
    return %arg0, %c0_i32, %c0_i32_0 : i32, i32, i32
  }
}

</mosaic_0001>

<bundles_post_ra>
// kernel: tpu_custom_call.1
= control target key start
LH: loop header
LB: loop body
LE: loop exit
PB: predicated region body
PF: predicated region fallthrough
CT: control target
= control target key end

     0   :  { %9 = vsyncpa [#allocation4], 0  ;;  %s1493_s0 = inlined_call_operand.hbm [shape: f32[2,8,128], index: 0, kind: input, shape index: {}]   ;;  %s1494_s1 = inlined_call_operand.vmem [shape: f32[128,8], index: 1, kind: input, shape index: {}]   ;;  %s1495_s2 = inlined_call_operand.vmem [shape: f32[128,128], index: 2, kind: input, shape index: {}]   ;;  %s1496_s3 = inlined_call_operand.vmem [shape: f32[1,128], index: 3, kind: input, shape index: {}]   ;;  %s1497_s4 = inlined_call_operand.hbm [shape: f32[2,1,128], index: 4, kind: output, shape index: {}]  }
   0x1   :  { %11 = vsyncpa [#allocation4 + $0x1], 0 }
   0x2   :  { %12 = vsyncpa [#allocation5], 0 }
   0x3   :  { %14 = vsyncpa [#allocation5 + $0x1], 0  ;;  %s1156_s15 = smov 0   ;;  %s1158_s16 = smov 0  }
   0x4   :  { %s1160_s17 = smov 0   ;;  %s1162_s18 = smov 0  }
   0x5   :  { %s1164_s19 = smov 0   ;;  %s1166_s20 = smov 0  }
   0x6 LB: > { %s801_s21 = sadd.s32 4294967295, %s1124_s20   ;;  %s802_s22 = sadd.s32 4294967294, %s1124_s20   ;;  %s1124_s20 = sphi %s1166_s20, %s20_s20   ;;  %s1120_s19 = sphi %s1164_s19, %s1513_s19   ;;  %s1116_s18 = sphi %s1162_s18, %s1512_s18   ;;  %s1112_s17 = sphi %s1160_s17, %s1511_s17   ;;  %s1108_s16 = sphi %s1158_s16, %s1510_s16   ;;  %s1104_s15 = sphi %s1156_s15, %s1509_s15  }
   0x7   : > { %s32_s23 = sadd.s32 1, %s1120_s19  ;;  %s41_s24 = sadd.s32 1, %s1112_s17 }
   0x8   : > { %p34_p0 = scmp.ge.s32.totalorder %s32_s23, 2  ;;  %p48_p1 = scmp.ne.s32.totalorder %s1112_s17, %s1108_s16 }
   0x9   : > { %p49_p2 = scmp.eq.s32.totalorder %s1124_s20, 0  ;;  %p54_p3 = scmp.ne.s32.totalorder %s1108_s16, %s1104_s15 }
   0xa   : > { %s1515_s23 = smov (%p34_p0, %s32_s23), 0  ;;  %p55_p5 = scmp.eq.s32.totalorder %s801_s21, 0 }
   0xb   : > { %p1197_p4 = por %p49_p2, %p48_p1  ;;  %s36_s26 = ssub.s32 %s1120_s19, %s1515_s23 }
   0xc   : > { %p141_p6 = scmp.eq.s32.totalorder %s801_s21, 1  ;;  %p39_p7 = scmp.eq.s32.totalorder %s36_s26, 0 }
   0xd   : > { %p1203_p8 = por %p55_p5, %p54_p3  ;;  %p147_p10 = scmp.eq.s32.totalorder %s802_s22, 1 }
   0xe   : > { %p1207_p9 = por %p141_p6, %p48_p1  ;;  %p959_p13 = scmp.lt.s32.totalorder %s1124_s20, 2 }
   0xf   : > { %s1212_s29 = scalar_select %p39_p7, %s1112_s17, %s41_s24  }
  0x10   : > { %s1501_s28 = scalar_select %p1207_p9, 1, 0 }
  0x11   : > { %p1214_p11 = por %p147_p10, %p54_p3  ;;  %s176_s5 = sand.u32 1, %s1112_s17  }
  0x12   : > { %s805_s6 = sshll.u32 %s176_s5, 3  ;;  %s806_s7 = sshll.u32 %s1120_s19, 7 }
  0x13   : > { %s1502_s30 = scalar_select %p1214_p11, 1, 0 }
  0x14   : > { %s1225_s10 = scalar_lea.hbm %s1493_s0, %s806_s7  ;;  %s180_s11 = scalar_lea.vmem [#allocation3], %s805_s6 }
  0x15   : > { %s188_s12 = sshll.u32 %s180_s11, 4  ;;  %p1231_p0 = pnand %p959_p13, %p1197_p4  ;;  %s1227_s12 = int_to_ptr.vmem [resolvable:$true] %s188_s12 }
  0x16   : > { %s177_s14 = scalar_lea.sflag [#allocation4], %s176_s5  ;;  %s1012_s21 = scalar_lea.hbm %s1225_s10, 128 }
  0x17   : > { %p1013_p3 = scmp.ne.s32.totalorder %s1225_s10, %s1012_s21  ;;  %p1014_p5 = pneg %p1231_p0 }
  0x18   : > { %s1017_s25 = scalar_lea.hbm %s1493_s0, 256  ;;  %p1018_p4 = scmp.lt.u32.totalorder %s1225_s10, %s1493_s0 }
  0x19   : > { %p1015_p6 = pnand %p1014_p5, %p1013_p3  ;;  %p1019_p10 = scmp.lt.u32.totalorder %s1017_s25, %s1012_s21 }
  0x1a   : > { %p1021_p12 = scmp.lt.u32.totalorder %s1012_s21, %s1225_s10 }
  0x1b   : > { %p1016_p7 = pneg %p1015_p6  ;;  %p1020_p13 = por %p1019_p10, %p1018_p4 }
  0x1d   : > { %p1022_p1 = por %p1021_p12, %p1020_p13 }
  0x1f   : > { %p1023_p2 = pnand %p1022_p1, %p1016_p7 }
  0x21   : > { %1026 = shalt.err (!%p1023_p2)
}
  0x22   : > { %s1027_s5 = scalar_lea.vmem %s1227_s12, 128  ;;  %s1126_s7 = smov [#allocation3]  }
  0x23   : > { %p1028_p3 = scmp.ne.s32.totalorder %s1227_s12, %s1027_s5  ;;  %s1032_s8 = sshll.u32 %s1126_s7, 4  ;;  %s1033_s8 = int_to_ptr.vmem [resolvable:$false] %s1032_s8 }
  0x24   : > { %s1034_s9 = scalar_lea.vmem %s1033_s8, 256  ;;  %p1035_p9 = scmp.lt.s32.totalorder %s1227_s12, %s1033_s8 }
  0x25   : > { %p1030_p6 = pnand %p1028_p3, %p1014_p5  ;;  %p1036_p4 = scmp.lt.s32.totalorder %s1034_s9, %s1027_s5 }
  0x27   : > { %p1031_p11 = pneg %p1030_p6  ;;  %p1037_p10 = por %p1036_p4, %p1035_p9 }
  0x29   : > { %p1038_p12 = pnand %p1037_p10, %p1031_p11 }
  0x2b   : > { %1041 = shalt.err (!%p1038_p12)
}
  0x2c   : > { %954 = dma.hbm_to_vmem [thread:$0]  (!%p1231_p0), %s1225_s10, 128, %s1227_s12, %s177_s14  }
  0x2d   : > { %p1504_p1 = scmp.lt.s32.totalorder %s1124_s20, 3  ;;  %p1505_p2 = scmp.ge.s32.totalorder %s1124_s20, 1 }
  0x2f   : > { %p194_p5 = pnand %p1505_p2, %p1504_p1 }
  0x30   : > { %s1267_s11 = sand.u32 (!%p194_p5), 1, %s1108_s16  }
  0x31   : > { %197 = sbr.rel (%p194_p5) target bundleno = 789 (0x315), region = 36  ;;  %s808_s21 = sshll.u32 (!%p194_p5), %s1267_s11, 3 }
  0x32   : > { %s200_s22 = scalar_lea.sflag (!%p194_p5), [#allocation4], %s1267_s11  ;;  %s203_s24 = scalar_lea.vmem (!%p194_p5), [#allocation3], %s808_s21 }
  0x38   : > { %1095 = dma.done.wait (%p1203_p8), %s200_s22, 128  }
  0x39   : > { %1097 = vsyncadd (%p1203_p8), %s200_s22, 4294967168  ;;  %vm265_vm0 = vcmask 64512   ;;  %v264_v0 = vld [vmem:[%s203_s24] sm:$0xff]  ;;  %v250_v3 = vld [vmem:[%s1494_s1 + $0x10] sm:$0xff]  ;;  %vm231_vm1 = vcmask 7168   ;;  %v1127_v17 = vmov 0.0  }
  0x3a   : > { %v248_v1 = vld [vmem:[%s1494_s1] sm:$0xff]  ;;  %v249_v2 = vld [vmem:[%s1494_s1 + $0x8] sm:$0xff]  ;;  %862 = vmatprep.subr.mxu0 %v264_v0  ;;  %v251_v4 = vld [vmem:[%s1494_s1 + $0x18] sm:$0xff]  ;;  %233 = vst.msk [vmem:[#allocation2 + $0x8] sm:$0xff] %vm231_vm1, %v1127_v17  ;;  %v1128_v53 = vmov 0.0|0.0   ;;  %vm1129_vm2 = vmmov 0  }
  0x3b   : > { %864 = vmatprep.mubr.msk.f32.mxu0 %vm265_vm0, %v248_v1  ;;  %863 = vmatpush3.msra.mxu0 %v264_v0  ;;  %v252_v5 = vld [vmem:[%s1494_s1 + $0x20] sm:$0xff]  ;;  %v253_v6 = vld [vmem:[%s1494_s1 + $0x28] sm:$0xff]  ;;  %v254_v7 = vld [vmem:[%s1494_s1 + $0x30] sm:$0xff]  ;;  %232 = vst.msk [vmem:[#allocation2] sm:$0xff] %vm231_vm1, %v1127_v17  ;;  %s825_s27 = sshll.u32 %s1116_s18, 4  ;;  %s226_s6 = scalar_lea.vmem [#allocation6], %s1267_s11 }
  0x3c   : > { %865 = vmatmul.mubr.msk.f32.vlgmr.msra.gmra.mrb[0].mxu0 %vm265_vm0, %v249_v2  ;;  %v255_v8 = vld [vmem:[%s1494_s1 + $0x38] sm:$0xff]  ;;  %v256_v9 = vld [vmem:[%s1494_s1 + $0x40] sm:$0xff]  ;;  %v257_v10 = vld [vmem:[%s1494_s1 + $0x48] sm:$0xff]  ;;  %234 = vst.msk [vmem:[#allocation2 + $0x10] sm:$0xff] %vm231_vm1, %v1127_v17  ;;  %923 = vmatprep.subr.bf16.mxu1 %v1128_v53  ;;  %s726_s5 = sshll.u32 %s226_s6, 4  ;;  %s1444_s9 = scalar_lea.hbm %s1497_s4, %s825_s27  ;;  %s1446_s5 = int_to_ptr.vmem [resolvable:$true] %s726_s5 }
  0x3d   : > { %867 = vmatprep.mubr.msk.f32.mxu0 %vm265_vm0, %v250_v3  ;;  %v258_v11 = vld [vmem:[%s1494_s1 + $0x50] sm:$0xff]  ;;  %v259_v12 = vld [vmem:[%s1494_s1 + $0x58] sm:$0xff]  ;;  %v260_v13 = vld [vmem:[%s1494_s1 + $0x60] sm:$0xff]  ;;  %235 = vst.msk [vmem:[#allocation2 + $0x18] sm:$0xff] %vm231_vm1, %v1127_v17  ;;  %920 = vmatprep.mubr.msk.f32.mxu1 %vm1129_vm2, %v1127_v17  ;;  %s714_s21 = scalar_lea.sflag [#allocation5], %s1267_s11  ;;  %s1042_s22 = scalar_lea.vmem %s1446_s5, 16 }
  0x3e   : > { %v261_v14 = vld [vmem:[%s1494_s1 + $0x68] sm:$0xff]  ;;  %v262_v15 = vld [vmem:[%s1494_s1 + $0x70] sm:$0xff]  ;;  %v263_v16 = vld [vmem:[%s1494_s1 + $0x78] sm:$0xff]  ;;  %236 = vst.msk [vmem:[#allocation2 + $0x20] sm:$0xff] %vm231_vm1, %v1127_v17  ;;  %p1043_p8 = scmp.ne.s32.totalorder %s1446_s5, %s1042_s22  ;;  %p1506_p9 = scmp.ne.s32.totalorder %s1501_s28, 0 }
  0x3f   : > { %237 = vst.msk [vmem:[#allocation2 + $0x28] sm:$0xff] %vm231_vm1, %v1127_v17  ;;  %238 = vst.msk [vmem:[#allocation2 + $0x30] sm:$0xff] %vm231_vm1, %v1127_v17  ;;  %v591_v50 = vld [vmem:[%s1495_s2] sm:$0xff]  ;;  %v592_v51 = vld [vmem:[%s1495_s2 + $0x8] sm:$0xff]  ;;  %s1130_s18 = smov [#allocation6]  }
  0x40   : > { %868 = vmatmul.mubr.msk.f32.gmra.mrb[2].mxu0 %vm265_vm0, %v251_v4  ;;  %239 = vst.msk [vmem:[#allocation2 + $0x38] sm:$0xff] %vm231_vm1, %v1127_v17  ;;  %240 = vst.msk [vmem:[#allocation2 + $0x40] sm:$0xff] %vm231_vm1, %v1127_v17  ;;  %v593_v52 = vld [vmem:[%s1495_s2 + $0x10] sm:$0xff]  ;;  %v924_v54 = vpack.c.bf16 %v592_v51, %v591_v50  ;;  %v594_v55 = vld [vmem:[%s1495_s2 + $0x18] sm:$0xff]  ;;  %p1044_p11 = pnand %p1043_p8, %p1506_p9  ;;  %s1046_s24 = sshll.u32 %s1130_s18, 4  ;;  %s1047_s24 = int_to_ptr.vmem [resolvable:$false] %s1046_s24 }
  0x41   : > { %870 = vmatprep.mubr.msk.f32.mxu0 %vm265_vm0, %v252_v5  ;;  %241 = vst.msk [vmem:[#allocation2 + $0x48] sm:$0xff] %vm231_vm1, %v1127_v17  ;;  %242 = vst.msk [vmem:[#allocation2 + $0x50] sm:$0xff] %vm231_vm1, %v1127_v17  ;;  %v927_v56 = vpack.c.bf16 %v594_v55, %v593_v52  ;;  %v595_v57 = vld [vmem:[%s1495_s2 + $0x20] sm:$0xff]  ;;  %v596_v58 = vld [vmem:[%s1495_s2 + $0x28] sm:$0xff]  ;;  %s1048_s10 = scalar_lea.vmem %s1047_s24, 32  ;;  %p1049_p7 = scmp.lt.s32.totalorder %s1446_s5, %s1047_s24 }
  0x42   : > { %243 = vst.msk [vmem:[#allocation2 + $0x58] sm:$0xff] %vm231_vm1, %v1127_v17  ;;  %244 = vst.msk [vmem:[#allocation2 + $0x60] sm:$0xff] %vm231_vm1, %v1127_v17  ;;  %925 = vmatpush3.bf16.msra.mxu1 %v924_v54  ;;  %v930_v59 = vpack.c.bf16 %v596_v58, %v595_v57  ;;  %v597_v60 = vld [vmem:[%s1495_s2 + $0x30] sm:$0xff]  ;;  %v598_v61 = vld [vmem:[%s1495_s2 + $0x38] sm:$0xff]  ;;  %p1045_p0 = pneg %p1044_p11  ;;  %p1050_p13 = scmp.lt.s32.totalorder %s1048_s10, %s1042_s22 }
  0x43   : > { %245 = vst.msk [vmem:[#allocation2 + $0x68] sm:$0xff] %vm231_vm1, %v1127_v17  ;;  %246 = vst.msk [vmem:[#allocation2 + $0x70] sm:$0xff] %vm231_vm1, %v1127_v17  ;;  %926 = vmatprep.subr.bf16.mxu1 %v1128_v53  ;;  %v933_v62 = vpack.c.bf16 %v598_v61, %v597_v60  ;;  %v599_v63 = vld [vmem:[%s1495_s2 + $0x40] sm:$0xff]  ;;  %v600_v0 = vld [vmem:[%s1495_s2 + $0x48] sm:$0xff] }
  0x44   : > { %871 = vmatmul.mubr.msk.f32.gmra.mrb[4].mxu0 %vm265_vm0, %v253_v6  ;;  %247 = vst.msk [vmem:[#allocation2 + $0x78] sm:$0xff] %vm231_vm1, %v1127_v17  ;;  %v936_v1 = vpack.c.bf16 %v600_v0, %v599_v63  ;;  %v601_v2 = vld [vmem:[%s1495_s2 + $0x50] sm:$0xff]  ;;  %v602_v3 = vld [vmem:[%s1495_s2 + $0x58] sm:$0xff]  ;;  %v603_v5 = vld [vmem:[%s1495_s2 + $0x60] sm:$0xff]  ;;  %p1051_p3 = por %p1050_p13, %p1049_p7 }
  0x45   : > { %873 = vmatprep.mubr.msk.f32.mxu0 %vm265_vm0, %v254_v7  ;;  %v939_v4 = vpack.c.bf16 %v602_v3, %v601_v2  ;;  %v604_v6 = vld [vmem:[%s1495_s2 + $0x68] sm:$0xff] }
  0x46   : > { %928 = vmatpush3.bf16.msra.mxu1 %v927_v56  ;;  %v942_v7 = vpack.c.bf16 %v604_v6, %v603_v5  ;;  %p1052_p6 = pnand %p1051_p3, %p1045_p0 }
  0x47   : > { %929 = vmatprep.subr.bf16.mxu1 %v1128_v53 }
  0x48   : > { %874 = vmatmul.mubr.msk.f32.gmra.mrb[6].mxu0 %vm265_vm0, %v255_v8  ;;  %v605_v8 = vld [vmem:[%s1495_s2 + $0x70] sm:$0xff] }
  0x49   : > { %876 = vmatprep.mubr.msk.f32.mxu0 %vm265_vm0, %v256_v9  ;;  %v606_v9 = vld [vmem:[%s1495_s2 + $0x78] sm:$0xff] }
  0x4a   : > { %931 = vmatpush3.bf16.msra.mxu1 %v930_v59  ;;  %v504_v54 = vld [vmem:[#allocation2 + $0x68] sm:$0xff]  ;;  %v505_v55 = vld [vmem:[#allocation2 + $0x70] sm:$0xff] }
  0x4b   : > { %932 = vmatprep.subr.bf16.mxu1 %v1128_v53  ;;  %v506_v61 = vld [vmem:[#allocation2 + $0x78] sm:$0xff] }
  0x4c   : > { %877 = vmatmul.mubr.msk.f32.gmra.mrb[8].mxu0 %vm265_vm0, %v257_v10  ;;  %v945_v10 = vpack.c.bf16 %v606_v9, %v605_v8 }
  0x4d   : > { %879 = vmatprep.mubr.msk.f32.mxu0 %vm265_vm0, %v258_v11  ;;  %v492_v11 = vld [vmem:[#allocation2 + $0x8] sm:$0xff] }
  0x4e   : > { %934 = vmatpush3.bf16.msra.mxu1 %v933_v62 }
  0x4f   : > { %935 = vmatprep.subr.bf16.mxu1 %v1128_v53 }
  0x50   : > { %880 = vmatmul.mubr.msk.f32.gmra.mrb[10].mxu0 %vm265_vm0, %v259_v12 }
  0x51   : > { %882 = vmatprep.mubr.msk.f32.mxu0 %vm265_vm0, %v260_v13 }
  0x52   : > { %937 = vmatpush3.bf16.msra.mxu1 %v936_v1 }
  0x53   : > { %938 = vmatprep.subr.bf16.mxu1 %v1128_v53 }
  0x54   : > { %883 = vmatmul.mubr.msk.f32.gmra.mrb[12].mxu0 %vm265_vm0, %v261_v14  ;;  %v491_v14 = vld [vmem:[#allocation2] sm:$0xff] }
  0x55   : > { %885 = vmatprep.mubr.msk.f32.mxu0 %vm265_vm0, %v262_v15  ;;  %v493_v15 = vld [vmem:[#allocation2 + $0x10] sm:$0xff] }
  0x56   : > { %940 = vmatpush3.bf16.msra.mxu1 %v939_v4 }
  0x57   : > { %941 = vmatprep.subr.bf16.mxu1 %v1128_v53 }
  0x58   : > { %886 = vmatmul.mubr.msk.f32.gmra.mrb[14].mxu0 %vm265_vm0, %v263_v16 }
  0x5a   : > { %943 = vmatpush3.bf16.msra.mxu1 %v942_v7 }
  0x5b   : > { %944 = vmatprep.subr.bf16.mxu1 %v1128_v53 }
  0x5e   : > { %946 = vmatpush3.bf16.msra.mxu1 %v945_v10 }
 0x10f   : > { %v866_v18 = vpop.f32.mrb[0].mxu0 }
 0x110   : > { %v380_v19 = vpop.f32.mrb[1].mxu0  ;;  %v460_v20 = vmax.f32 %v866_v18, 0.0 }
 0x111   : > { %v459_v22 = vmax.f32 %v380_v19, 0.0 }
 0x112   : > { %509 = vadd.xlane.f32.xlu0 %v460_v20  ;;  %v494_v20 = vld [vmem:[#allocation2 + $0x18] sm:$0xff] }
 0x113   : > { %v869_v21 = vpop.f32.mrb[2].mxu0 }
 0x114   : > { %v390_v23 = vpop.f32.mrb[3].mxu0  ;;  %v462_v25 = vmax.f32 %v869_v21, 0.0  ;;  %v495_v21 = vld [vmem:[#allocation2 + $0x20] sm:$0xff] }
 0x115   : > { %v461_v24 = vmax.f32 %v390_v23, 0.0 }
 0x116   : > { %507 = vadd.xlane.f32.xlu0 %v459_v22 }
 0x117   : > { %511 = vadd.xlane.f32.xlu1 %v461_v24  ;;  %v872_v26 = vpop.f32.mrb[4].mxu0 }
 0x118   : > { %v400_v27 = vpop.f32.mrb[5].mxu0  ;;  %v464_v29 = vmax.f32 %v872_v26, 0.0  ;;  %v496_v26 = vld [vmem:[#allocation2 + $0x28] sm:$0xff] }
 0x119   : > { %v463_v28 = vmax.f32 %v400_v27, 0.0  ;;  %v497_v27 = vld [vmem:[#allocation2 + $0x30] sm:$0xff] }
 0x11b   : > { %513 = vadd.xlane.f32.xlu1 %v462_v25  ;;  %515 = vadd.xlane.f32.xlu0 %v463_v28  ;;  %v875_v30 = vpop.f32.mrb[6].mxu0 }
 0x11c   : > { %v410_v31 = vpop.f32.mrb[7].mxu0  ;;  %v466_v33 = vmax.f32 %v875_v30, 0.0 }
 0x11d   : > { %v465_v32 = vmax.f32 %v410_v31, 0.0 }
 0x11f   : > { %517 = vadd.xlane.f32.xlu1 %v464_v29  ;;  %519 = vadd.xlane.f32.xlu0 %v465_v32  ;;  %v878_v34 = vpop.f32.mrb[8].mxu0 }
 0x120   : > { %v420_v35 = vpop.f32.mrb[9].mxu0  ;;  %v468_v37 = vmax.f32 %v878_v34, 0.0  ;;  %v499_v34 = vld [vmem:[#allocation2 + $0x40] sm:$0xff] }
 0x121   : > { %v467_v36 = vmax.f32 %v420_v35, 0.0 }
 0x123   : > { %521 = vadd.xlane.f32.xlu1 %v466_v33  ;;  %523 = vadd.xlane.f32.xlu0 %v467_v36  ;;  %v881_v38 = vpop.f32.mrb[10].mxu0  ;;  %v498_v33 = vld [vmem:[#allocation2 + $0x38] sm:$0xff] }
 0x124   : > { %v430_v39 = vpop.f32.mrb[11].mxu0  ;;  %v470_v41 = vmax.f32 %v881_v38, 0.0 }
 0x125   : > { %v469_v40 = vmax.f32 %v430_v39, 0.0 }
 0x127   : > { %525 = vadd.xlane.f32.xlu1 %v468_v37  ;;  %527 = vadd.xlane.f32.xlu0 %v469_v40  ;;  %v884_v42 = vpop.f32.mrb[12].mxu0  ;;  %v500_v40 = vld [vmem:[#allocation2 + $0x48] sm:$0xff] }
 0x128   : > { %v440_v43 = vpop.f32.mrb[13].mxu0  ;;  %v472_v45 = vmax.f32 %v884_v42, 0.0 }
 0x129   : > { %v471_v44 = vmax.f32 %v440_v43, 0.0 }
 0x12b   : > { %529 = vadd.xlane.f32.xlu1 %v470_v41  ;;  %531 = vadd.xlane.f32.xlu0 %v471_v44  ;;  %v887_v46 = vpop.f32.mrb[14].mxu0  ;;  %v501_v41 = vld [vmem:[#allocation2 + $0x50] sm:$0xff] }
 0x12c   : > { %v450_v47 = vpop.f32.mrb[15].mxu0  ;;  %v474_v49 = vmax.f32 %v887_v46, 0.0 }
 0x12d   : > { %v473_v48 = vmax.f32 %v450_v47, 0.0  ;;  %v502_v47 = vld [vmem:[#allocation2 + $0x58] sm:$0xff] }
 0x12f   : > { %533 = vadd.xlane.f32.xlu1 %v472_v45  ;;  %535 = vadd.xlane.f32.xlu0 %v473_v48  ;;  %v503_v48 = vld [vmem:[#allocation2 + $0x60] sm:$0xff] }
 0x133   : > { %537 = vadd.xlane.f32.xlu1 %v474_v49 }
 0x19f   : > { %v510_v12 = vpop.xlane.xlu0 %509 }
 0x1a0   : > { %v540_v13 = vadd.f32 %v510_v12, %v492_v11 }
 0x1a2   : > { %557 = vst.msk [vmem:[#allocation2 + $0x8] sm:$0xff] %vm231_vm1, %v540_v13  ;;  %v710_v13 = vld [vmem:[%s1496_s3] sm:$0x1] }
 0x1a3   : > { %v508_v16 = vpop.xlane.xlu0 %507 }
 0x1a4   : > { %v539_v17 = vadd.f32 %v508_v16, %v491_v14  ;;  %v512_v18 = vpop.xlane.xlu1 %511 }
 0x1a5   : > { %v541_v19 = vadd.f32 %v512_v18, %v493_v15 }
 0x1a6   : > { %556 = vst.msk [vmem:[#allocation2] sm:$0xff] %vm231_vm1, %v539_v17 }
 0x1a7   : > { %558 = vst.msk [vmem:[#allocation2 + $0x10] sm:$0xff] %vm231_vm1, %v541_v19 }
 0x1a8   : > { %v514_v22 = vpop.xlane.xlu1 %513  ;;  %v516_v23 = vpop.xlane.xlu0 %515 }
 0x1a9   : > { %v542_v24 = vadd.f32 %v514_v22, %v494_v20  ;;  %v543_v25 = vadd.f32 %v516_v23, %v495_v21  ;;  %v576_v37 = vld [vmem:[#allocation2 + $0x8] sm:$0xff] }
 0x1ab   : > { %559 = vst.msk [vmem:[#allocation2 + $0x18] sm:$0xff] %vm231_vm1, %v542_v24  ;;  %560 = vst.msk [vmem:[#allocation2 + $0x20] sm:$0xff] %vm231_vm1, %v543_v25 }
 0x1ac   : > { %v518_v28 = vpop.xlane.xlu1 %517  ;;  %v520_v29 = vpop.xlane.xlu0 %519 }
 0x1ad   : > { %v575_v30 = vld [vmem:[#allocation2] sm:$0xff]  ;;  %v544_v31 = vadd.f32 %v518_v28, %v496_v26  ;;  %v545_v32 = vadd.f32 %v520_v29, %v497_v27 }
 0x1ae   : > { %607 = vxpose.xlu0.b32.start [1/16] (narrow) %v575_v30, 8  ;;  %v577_v42 = vld [vmem:[#allocation2 + $0x10] sm:$0xff] }
 0x1af   : > { %561 = vst.msk [vmem:[#allocation2 + $0x28] sm:$0xff] %vm231_vm1, %v544_v31  ;;  %562 = vst.msk [vmem:[#allocation2 + $0x30] sm:$0xff] %vm231_vm1, %v545_v32 }
 0x1b0   : > { %v522_v35 = vpop.xlane.xlu1 %521  ;;  %v524_v36 = vpop.xlane.xlu0 %523 }
 0x1b1   : > { %v546_v38 = vadd.f32 %v522_v35, %v498_v33  ;;  %v547_v39 = vadd.f32 %v524_v36, %v499_v34 }
 0x1b2   : > { %608 = vxpose.xlu0.b32.cont [2/16] (narrow) %v576_v37, 8  ;;  %v578_v51 = vld [vmem:[#allocation2 + $0x18] sm:$0xff]  ;;  %v579_v56 = vld [vmem:[#allocation2 + $0x20] sm:$0xff] }
 0x1b3   : > { %563 = vst.msk [vmem:[#allocation2 + $0x38] sm:$0xff] %vm231_vm1, %v546_v38  ;;  %564 = vst.msk [vmem:[#allocation2 + $0x40] sm:$0xff] %vm231_vm1, %v547_v39 }
 0x1b4   : > { %v526_v43 = vpop.xlane.xlu1 %525  ;;  %v528_v44 = vpop.xlane.xlu0 %527 }
 0x1b5   : > { %v548_v45 = vadd.f32 %v526_v43, %v500_v40  ;;  %v549_v46 = vadd.f32 %v528_v44, %v501_v41 }
 0x1b6   : > { %609 = vxpose.xlu0.b32.cont [3/16] (narrow) %v577_v42, 8  ;;  %v580_v63 = vld [vmem:[#allocation2 + $0x28] sm:$0xff]  ;;  %v581_v1 = vld [vmem:[#allocation2 + $0x30] sm:$0xff] }
 0x1b7   : > { %565 = vst.msk [vmem:[#allocation2 + $0x48] sm:$0xff] %vm231_vm1, %v548_v45  ;;  %566 = vst.msk [vmem:[#allocation2 + $0x50] sm:$0xff] %vm231_vm1, %v549_v46 }
 0x1b8   : > { %v530_v49 = vpop.xlane.xlu1 %529  ;;  %v532_v50 = vpop.xlane.xlu0 %531 }
 0x1b9   : > { %v550_v52 = vadd.f32 %v530_v49, %v502_v47  ;;  %v551_v53 = vadd.f32 %v532_v50, %v503_v48 }
 0x1ba   : > { %610 = vxpose.xlu0.b32.cont [4/16] (narrow) %v578_v51, 8  ;;  %v582_v2 = vld [vmem:[#allocation2 + $0x38] sm:$0xff]  ;;  %v583_v3 = vld [vmem:[#allocation2 + $0x40] sm:$0xff] }
 0x1bb   : > { %567 = vst.msk [vmem:[#allocation2 + $0x58] sm:$0xff] %vm231_vm1, %v550_v52  ;;  %568 = vst.msk [vmem:[#allocation2 + $0x60] sm:$0xff] %vm231_vm1, %v551_v53 }
 0x1bc   : > { %v534_v57 = vpop.xlane.xlu1 %533  ;;  %v536_v58 = vpop.xlane.xlu0 %535 }
 0x1bd   : > { %v552_v59 = vadd.f32 %v534_v57, %v504_v54  ;;  %v553_v60 = vadd.f32 %v536_v58, %v505_v55 }
 0x1be   : > { %611 = vxpose.xlu0.b32.cont [5/16] (narrow) %v579_v56, 8  ;;  %v584_v4 = vld [vmem:[#allocation2 + $0x48] sm:$0xff]  ;;  %v585_v5 = vld [vmem:[#allocation2 + $0x50] sm:$0xff] }
 0x1bf   : > { %569 = vst.msk [vmem:[#allocation2 + $0x68] sm:$0xff] %vm231_vm1, %v552_v59  ;;  %570 = vst.msk [vmem:[#allocation2 + $0x70] sm:$0xff] %vm231_vm1, %v553_v60 }
 0x1c0   : > { %v538_v62 = vpop.xlane.xlu1 %537 }
 0x1c1   : > { %v554_v0 = vadd.f32 %v538_v62, %v506_v61 }
 0x1c2   : > { %612 = vxpose.xlu0.b32.cont [6/16] (narrow) %v580_v63, 8  ;;  %v586_v6 = vld [vmem:[#allocation2 + $0x58] sm:$0xff]  ;;  %v587_v7 = vld [vmem:[#allocation2 + $0x60] sm:$0xff] }
 0x1c3   : > { %571 = vst.msk [vmem:[#allocation2 + $0x78] sm:$0xff] %vm231_vm1, %v554_v0 }
 0x1c6   : > { %613 = vxpose.xlu0.b32.cont [7/16] (narrow) %v581_v1, 8  ;;  %v588_v8 = vld [vmem:[#allocation2 + $0x68] sm:$0xff]  ;;  %v589_v9 = vld [vmem:[#allocation2 + $0x70] sm:$0xff] }
 0x1ca   : > { %614 = vxpose.xlu0.b32.cont [8/16] (narrow) %v582_v2, 8  ;;  %v590_v10 = vld [vmem:[#allocation2 + $0x78] sm:$0xff] }
 0x1ce   : > { %615 = vxpose.xlu0.b32.cont [9/16] (narrow) %v583_v3, 8 }
 0x1d2   : > { %616 = vxpose.xlu0.b32.cont [10/16] (narrow) %v584_v4, 8 }
 0x1d6   : > { %617 = vxpose.xlu0.b32.cont [11/16] (narrow) %v585_v5, 8 }
 0x1da   : > { %618 = vxpose.xlu0.b32.cont [12/16] (narrow) %v586_v6, 8 }
 0x1de   : > { %619 = vxpose.xlu0.b32.cont [13/16] (narrow) %v587_v7, 8 }
 0x1e2   : > { %620 = vxpose.xlu0.b32.cont [14/16] (narrow) %v588_v8, 8 }
 0x1e6   : > { %621 = vxpose.xlu0.b32.cont [15/16] (narrow) %v589_v9, 8 }
 0x1ea   : > { %622 = vxpose.xlu0.b32.end [16/16] (narrow) %v590_v10, 8 }
 0x22e   : > { %v623_v11 = vpop.trf.xlu0 }
 0x22f   : > { %921 = vmatmul.mubr.f32.vlgmr.msra.gmra.mrb[0].mxu1 %v623_v11 }
 0x302   : > { %v705_v12 = vpop.f32.mrb[0].mxu1 }
 0x303   : > { %v709_v14 = vmul.f32 0.0625, %v705_v12  ;;  %v922_v15 = vpop.f32.mrb[1].mxu1 }
 0x305   : > { %v711_v16 = vadd.f32 %v710_v13, %v709_v14 }
 0x307   : > { %712 = vst [vmem:[%s226_s6] sm:$0x1] %v711_v16 }
 0x308   : > { %1055 = shalt.err (!%p1052_p6)
}
 0x309   : > { %s1056_s11 = scalar_lea.hbm %s1444_s9, 16  ;;  %s1060_s14 = scalar_lea.hbm %s1497_s4, 32 }
 0x30a   : > { %p1057_p4 = scmp.ne.s32.totalorder %s1444_s9, %s1056_s11  ;;  %p1061_p1 = scmp.lt.u32.totalorder %s1444_s9, %s1497_s4 }
 0x30b   : > { %p1062_p2 = scmp.lt.u32.totalorder %s1060_s14, %s1056_s11  ;;  %p1064_p8 = scmp.lt.u32.totalorder %s1056_s11, %s1444_s9 }
 0x30c   : > { %p1058_p10 = pnand %p1057_p4, %p1506_p9 }
 0x30d   : > { %p1063_p5 = por %p1062_p2, %p1061_p1 }
 0x30e   : > { %p1059_p12 = pneg %p1058_p10 }
 0x30f   : > { %p1065_p11 = por %p1064_p8, %p1063_p5 }
 0x311   : > { %p1066_p0 = pnand %p1065_p11, %p1059_p12 }
 0x313   : > { %1069 = shalt.err (!%p1066_p0)
}
 0x314   : > { %949 = dma.vmem_to_hbm [thread:$0]  (%p1506_p9), %s1446_s5, 16, %s1444_s9, %s714_s21  }
 0x315 PF: > { %s738_s27 = sand.u32 1, %s1104_s15   ;;  %p1507_p7 = scmp.ne.s32.totalorder %s1502_s30, 0 }
 0x316   : > { %p1508_p13 = scmp.ge.s32.totalorder %s1124_s20, 2  ;;  %s739_s6 = scalar_lea.sflag [#allocation5], %s738_s27 }
 0x318   : > { %p956_p3 = pnand %p1508_p13, %p1507_p7 }
 0x31a   : > { %1099 = dma.done.wait (!%p956_p3), %s739_s6, 16  }
 0x31b   : > { %1101 = vsyncadd (!%p956_p3), %s739_s6, 4294967280  ;;  %s20_s20 = sadd.s32 1, %s1124_s20   ;;  %s1509_s15 = smov %s1108_s16 }
 0x31c   : > { %p17_p6 = scmp.ge.s32.totalorder %s20_s20, 4   ;;  %s1510_s16 = smov %s1112_s17 }
 0x31d   : > { %s1511_s17 = smov %s1212_s29  ;;  %s1512_s18 = smov %s1120_s19 }
 0x31e   : > { %s1513_s19 = smov %s1515_s23  ;;  %19 = sbr.rel (!%p17_p6) target bundleno = 6 (0x6), region = 89 }
 0x325   :  { %743 = vsyncpa [#allocation4], 1 }
 0x326   :  { %745 = vsyncpa [#allocation4 + $0x1], 1 }
 0x327   :  { %746 = vsyncpa [#allocation5], 1 }
 0x328   :  { %748 = vsyncpa [#allocation5 + $0x1], 1 }

</bundles_post_ra>
